<compile_context>
chip_gen: v7x
topology: tpu7x:2x2x1
jax: 0.10.0
libtpu: 0.0.40
codegen_flags: <defaults>
</compile_context>

<pallas_src>
import jax
import jax.numpy as jnp
from jax.experimental import pallas as pl
from jax.experimental.pallas import tpu as pltpu


# ----------------------------------------------------------------------------
# Kernels
# ----------------------------------------------------------------------------
def _outconv_vpu_kernel(w_ref, b_ref, x_ref, o_ref):
    """Small-channel path: weights/bias are SMEM scalars, contraction on VPU.

    w_ref: (Cout, Cin) f32 in SMEM
    b_ref: (Cout,)     f32 in SMEM
    x_ref: (Cin, TS)   VMEM tile (lane-dense spatial axis)
    o_ref: (Cout, TS)  VMEM tile
    """
    cout, cin = w_ref.shape
    x = x_ref[...]  # (Cin, TS)
    for co in range(cout):
        acc = x[0:1, :].astype(jnp.float32) * w_ref[co, 0]
        for ci in range(1, cin):
            acc = acc + x[ci:ci + 1, :].astype(jnp.float32) * w_ref[co, ci]
        o_ref[co:co + 1, :] = (acc + b_ref[co]).astype(o_ref.dtype)


def _outconv_dot_kernel(w_ref, b_ref, x_ref, o_ref):
    """Large-Cin path: (Cout, Cin) @ (Cin, TS) on the MXU, f32 accumulation.

    w_ref: (Cout, Cin) VMEM
    b_ref: (Cout, 1)   f32 VMEM
    x_ref: (Cin, TS)   VMEM tile
    o_ref: (Cout, TS)  VMEM tile
    """
    acc = jax.lax.dot_general(
        w_ref[...], x_ref[...],
        dimension_numbers=(((1,), (0,)), ((), ())),
        preferred_element_type=jnp.float32)
    o_ref[...] = (acc + b_ref[...]).astype(o_ref.dtype)


# ----------------------------------------------------------------------------
# Wrapper
# ----------------------------------------------------------------------------
def _pick_spatial_tile(S, cin, cout, itemsize, n_batch):
    """Largest lane-dense spatial tile that fits comfortably in scoped VMEM."""
    if S <= 128:
        return S  # block equal to the full dim is always legal
    # ~8 MiB budget for double-buffered input + output tiles: safe under the
    # 16 MiB scoped-VMEM default on v5e (and far under v6e/v7x limits), so no
    # vmem_limit_bytes override is required.
    budget = 8 * 1024 * 1024
    ts = budget // max(1, (cin + cout) * itemsize * 2)
    ts = min(S, 32768, max(128, ts))
    ts -= ts % 128
    ts = max(ts, 128)
    # v7x megacore: keep >= 2 grid steps so both TensorCores get work.
    if n_batch * pl.cdiv(S, ts) < 2:
        ts = max(128, pl.cdiv(pl.cdiv(S, 2), 128) * 128)
    return ts


def outconv_pallas(x, weight, bias):
    """1x1x1 Conv3d forward.

    x:      (N, Cin, D, H, W)
    weight: (Cout, Cin) or (Cout, Cin, 1, 1, 1)
    bias:   (Cout,)
    returns (N, Cout, D, H, W)
    """
    if weight.ndim == 5:
        weight = weight.reshape(weight.shape[0], weight.shape[1])
    N, Cin, D, H, W = x.shape
    Cout = weight.shape[0]
    S = D * H * W
    itemsize = jnp.dtype(x.dtype).itemsize

    # Contiguous reshape only — no transpose, no extra HBM traffic.
    x3 = x.reshape(N, Cin, S)

    ts = _pick_spatial_tile(S, Cin, Cout, itemsize, N)
    grid = (N, pl.cdiv(S, ts))

    cost = pl.CostEstimate(
        flops=2 * N * S * Cin * Cout,
        transcendentals=0,
        bytes_accessed=N * S * (Cin + Cout) * itemsize
        + weight.size * 4 + bias.size * 4,
    )

    use_mxu = Cin >= 64
    if not use_mxu:
        # Weights kept in f32 (deliberate: matches the f32 PyTorch reference
        # even if x is bf16); read as SMEM scalars inside the kernel.
        w_arg = weight.astype(jnp.float32)                 # (Cout, Cin)
        b_arg = bias.astype(jnp.float32)                   # (Cout,)
        kernel = _outconv_vpu_kernel
        w_spec = pl.BlockSpec(memory_space=pltpu.MemorySpace.SMEM)
        b_spec = pl.BlockSpec(memory_space=pltpu.MemorySpace.SMEM)
    else:
        w_arg = weight.astype(x.dtype)                     # (Cout, Cin)
        b_arg = bias.reshape(Cout, 1).astype(jnp.float32)  # (Cout, 1)
        kernel = _outconv_dot_kernel
        w_spec = pl.BlockSpec((Cout, Cin), lambda n, s: (0, 0))
        b_spec = pl.BlockSpec((Cout, 1), lambda n, s: (0, 0))

    out3 = pl.pallas_call(
        kernel,
        out_shape=jax.ShapeDtypeStruct((N, Cout, S), x.dtype),
        grid=grid,
        in_specs=[
            w_spec,
            b_spec,
            pl.BlockSpec((None, Cin, ts), lambda n, s: (n, 0, s)),
        ],
        out_specs=pl.BlockSpec((None, Cout, ts), lambda n, s: (n, 0, s)),
        compiler_params=pltpu.CompilerParams(
            dimension_semantics=("parallel", "parallel")),
        cost_estimate=cost,
    )(w_arg, b_arg, x3)

    return out3.reshape(N, Cout, D, H, W)


def init_outconv_params(key, in_channels, out_channels, dtype=jnp.float32):
    # PyTorch Conv3d default init (kaiming-uniform-ish):
    # fan_in = in_channels * 1 * 1 * 1 ; bound = 1/sqrt(fan_in)
    kw, kb = jax.random.split(key)
    bound = 1.0 / jnp.sqrt(jnp.float32(in_channels))
    weight = jax.random.uniform(kw, (out_channels, in_channels),
                                minval=-bound, maxval=bound, dtype=dtype)
    bias = jax.random.uniform(kb, (out_channels,),
                              minval=-bound, maxval=bound, dtype=dtype)
    return weight, bias


def _reference(x, weight, bias):
    return (jnp.einsum("ncdhw,oc->nodhw", x, weight)
            + bias[None, :, None, None, None])


if __name__ == "__main__":
    key = jax.random.PRNGKey(0)
    k1, k2, k3, k4 = jax.random.split(key, 4)

    # Case 1: typical OutConv head (small channels) -> VPU-FMA path.
    N, Cin, Cout, D, H, W = 2, 4, 3, 8, 16, 16
    x = jax.random.normal(k1, (N, Cin, D, H, W), dtype=jnp.float32)
    weight, bias = init_outconv_params(k2, Cin, Cout)
    y = jax.block_until_ready(outconv_pallas(x, weight, bias))
    y_ref = _reference(x, weight, bias)
    assert y.shape == (N, Cout, D, H, W)
    assert jnp.allclose(y, y_ref, atol=1e-5, rtol=1e-5)

    # Case 2: larger Cin exercises the MXU (dot) path.
    Cin2, D2, H2, W2 = 128, 4, 8, 8
    x2 = jax.random.normal(k3, (N, Cin2, D2, H2, W2), dtype=jnp.float32)
    w2, b2 = init_outconv_params(k4, Cin2, Cout)
    y2 = jax.block_until_ready(outconv_pallas(x2, w2, b2))
    y2_ref = _reference(x2, w2, b2)
    assert y2.shape == (N, Cout, D2, H2, W2)
    assert jnp.allclose(y2, y2_ref, atol=1e-4, rtol=1e-4)

    print("KERNEL_OK")
</pallas_src>

<mosaic_0001>
module attributes {stable_mosaic.version = 11 : i64} {
  func.func @_outconv_vpu_kernel(%arg0: i32, %arg1: i32, %arg2: memref<3x4xf32, #tpu.memory_space<smem>>, %arg3: memref<3xf32, #tpu.memory_space<smem>>, %arg4: memref<1x4x2048xf32, #tpu.memory_space<vmem>>, %arg5: memref<1x3x2048xf32, #tpu.memory_space<vmem>>) attributes {dimension_semantics = [#tpu.dimension_semantics<parallel>, #tpu.dimension_semantics<parallel>], iteration_bounds = array<i64: 2, 1>, scalar_prefetch = 0 : i64, scratch_operands = 0 : i64, tpu.core_type = #tpu.core_type<tc>, window_params = [{transform_indices = @transform_0, window_bounds = array<i64: 3, 4>}, {transform_indices = @transform_1, window_bounds = array<i64: 3>}, {transform_indices = @transform_2, window_bounds = array<i64: 1, 4, 2048>}, {transform_indices = @transform_3, window_bounds = array<i64: 1, 3, 2048>}]} {
    %c0 = arith.constant 0 : index
    %c0_0 = arith.constant 0 : index
    %c0_1 = arith.constant 0 : index
    %0 = vector.load %arg4[%c0, %c0_0, %c0_1] : memref<1x4x2048xf32, #tpu.memory_space<vmem>>, vector<1x4x2048xf32>
    %1 = vector.shape_cast %0 : vector<1x4x2048xf32> to vector<4x2048xf32>
    %2 = vector.extract_strided_slice %1 {offsets = [0, 0], sizes = [1, 2048], strides = [1, 1]} : vector<4x2048xf32> to vector<1x2048xf32>
    %c0_2 = arith.constant 0 : index
    %c0_3 = arith.constant 0 : index
    %3 = memref.load %arg2[%c0_2, %c0_3] : memref<3x4xf32, #tpu.memory_space<smem>>
    %4 = vector.broadcast %3 : f32 to vector<1x2048xf32>
    %5 = arith.mulf %2, %4 : vector<1x2048xf32>
    %6 = vector.extract_strided_slice %1 {offsets = [1, 0], sizes = [1, 2048], strides = [1, 1]} : vector<4x2048xf32> to vector<1x2048xf32>
    %c0_4 = arith.constant 0 : index
    %c1 = arith.constant 1 : index
    %7 = memref.load %arg2[%c0_4, %c1] : memref<3x4xf32, #tpu.memory_space<smem>>
    %8 = vector.broadcast %7 : f32 to vector<1x2048xf32>
    %9 = arith.mulf %6, %8 : vector<1x2048xf32>
    %10 = arith.addf %5, %9 : vector<1x2048xf32>
    %11 = vector.extract_strided_slice %1 {offsets = [2, 0], sizes = [1, 2048], strides = [1, 1]} : vector<4x2048xf32> to vector<1x2048xf32>
    %c0_5 = arith.constant 0 : index
    %c2 = arith.constant 2 : index
    %12 = memref.load %arg2[%c0_5, %c2] : memref<3x4xf32, #tpu.memory_space<smem>>
    %13 = vector.broadcast %12 : f32 to vector<1x2048xf32>
    %14 = arith.mulf %11, %13 : vector<1x2048xf32>
    %15 = arith.addf %10, %14 : vector<1x2048xf32>
    %16 = vector.extract_strided_slice %1 {offsets = [3, 0], sizes = [1, 2048], strides = [1, 1]} : vector<4x2048xf32> to vector<1x2048xf32>
    %c0_6 = arith.constant 0 : index
    %c3 = arith.constant 3 : index
    %17 = memref.load %arg2[%c0_6, %c3] : memref<3x4xf32, #tpu.memory_space<smem>>
    %18 = vector.broadcast %17 : f32 to vector<1x2048xf32>
    %19 = arith.mulf %16, %18 : vector<1x2048xf32>
    %20 = arith.addf %15, %19 : vector<1x2048xf32>
    %c0_7 = arith.constant 0 : index
    %21 = memref.load %arg3[%c0_7] : memref<3xf32, #tpu.memory_space<smem>>
    %22 = vector.broadcast %21 : f32 to vector<1x2048xf32>
    %23 = arith.addf %20, %22 : vector<1x2048xf32>
    %c0_8 = arith.constant 0 : index
    %c0_9 = arith.constant 0 : index
    %c0_10 = arith.constant 0 : index
    %24 = vector.load %arg5[%c0_8, %c0_9, %c0_10] : memref<1x3x2048xf32, #tpu.memory_space<vmem>>, vector<1x1x2048xf32>
    %25 = vector.shape_cast %24 : vector<1x1x2048xf32> to vector<1x2048xf32>
    %26 = vector.shape_cast %23 : vector<1x2048xf32> to vector<1x1x2048xf32>
    tpu.vector_store %arg5[%c0_8, %c0_9, %c0_10], %26 {strides = array<i32>} : memref<1x3x2048xf32, #tpu.memory_space<vmem>>, vector<1x1x2048xf32>,
    %27 = vector.extract_strided_slice %1 {offsets = [0, 0], sizes = [1, 2048], strides = [1, 1]} : vector<4x2048xf32> to vector<1x2048xf32>
    %c1_11 = arith.constant 1 : index
    %c0_12 = arith.constant 0 : index
    %28 = memref.load %arg2[%c1_11, %c0_12] : memref<3x4xf32, #tpu.memory_space<smem>>
    %29 = vector.broadcast %28 : f32 to vector<1x2048xf32>
    %30 = arith.mulf %27, %29 : vector<1x2048xf32>
    %31 = vector.extract_strided_slice %1 {offsets = [1, 0], sizes = [1, 2048], strides = [1, 1]} : vector<4x2048xf32> to vector<1x2048xf32>
    %c1_13 = arith.constant 1 : index
    %c1_14 = arith.constant 1 : index
    %32 = memref.load %arg2[%c1_13, %c1_14] : memref<3x4xf32, #tpu.memory_space<smem>>
    %33 = vector.broadcast %32 : f32 to vector<1x2048xf32>
    %34 = arith.mulf %31, %33 : vector<1x2048xf32>
    %35 = arith.addf %30, %34 : vector<1x2048xf32>
    %36 = vector.extract_strided_slice %1 {offsets = [2, 0], sizes = [1, 2048], strides = [1, 1]} : vector<4x2048xf32> to vector<1x2048xf32>
    %c1_15 = arith.constant 1 : index
    %c2_16 = arith.constant 2 : index
    %37 = memref.load %arg2[%c1_15, %c2_16] : memref<3x4xf32, #tpu.memory_space<smem>>
    %38 = vector.broadcast %37 : f32 to vector<1x2048xf32>
    %39 = arith.mulf %36, %38 : vector<1x2048xf32>
    %40 = arith.addf %35, %39 : vector<1x2048xf32>
    %41 = vector.extract_strided_slice %1 {offsets = [3, 0], sizes = [1, 2048], strides = [1, 1]} : vector<4x2048xf32> to vector<1x2048xf32>
    %c1_17 = arith.constant 1 : index
    %c3_18 = arith.constant 3 : index
    %42 = memref.load %arg2[%c1_17, %c3_18] : memref<3x4xf32, #tpu.memory_space<smem>>
    %43 = vector.broadcast %42 : f32 to vector<1x2048xf32>
    %44 = arith.mulf %41, %43 : vector<1x2048xf32>
    %45 = arith.addf %40, %44 : vector<1x2048xf32>
    %c1_19 = arith.constant 1 : index
    %46 = memref.load %arg3[%c1_19] : memref<3xf32, #tpu.memory_space<smem>>
    %47 = vector.broadcast %46 : f32 to vector<1x2048xf32>
    %48 = arith.addf %45, %47 : vector<1x2048xf32>
    %c0_20 = arith.constant 0 : index
    %c1_21 = arith.constant 1 : index
    %c0_22 = arith.constant 0 : index
    %49 = vector.load %arg5[%c0_20, %c1_21, %c0_22] : memref<1x3x2048xf32, #tpu.memory_space<vmem>>, vector<1x1x2048xf32>
    %50 = vector.shape_cast %49 : vector<1x1x2048xf32> to vector<1x2048xf32>
    %51 = vector.shape_cast %48 : vector<1x2048xf32> to vector<1x1x2048xf32>
    tpu.vector_store %arg5[%c0_20, %c1_21, %c0_22], %51 {strides = array<i32>} : memref<1x3x2048xf32, #tpu.memory_space<vmem>>, vector<1x1x2048xf32>,
    %52 = vector.extract_strided_slice %1 {offsets = [0, 0], sizes = [1, 2048], strides = [1, 1]} : vector<4x2048xf32> to vector<1x2048xf32>
    %c2_23 = arith.constant 2 : index
    %c0_24 = arith.constant 0 : index
    %53 = memref.load %arg2[%c2_23, %c0_24] : memref<3x4xf32, #tpu.memory_space<smem>>
    %54 = vector.broadcast %53 : f32 to vector<1x2048xf32>
    %55 = arith.mulf %52, %54 : vector<1x2048xf32>
    %56 = vector.extract_strided_slice %1 {offsets = [1, 0], sizes = [1, 2048], strides = [1, 1]} : vector<4x2048xf32> to vector<1x2048xf32>
    %c2_25 = arith.constant 2 : index
    %c1_26 = arith.constant 1 : index
    %57 = memref.load %arg2[%c2_25, %c1_26] : memref<3x4xf32, #tpu.memory_space<smem>>
    %58 = vector.broadcast %57 : f32 to vector<1x2048xf32>
    %59 = arith.mulf %56, %58 : vector<1x2048xf32>
    %60 = arith.addf %55, %59 : vector<1x2048xf32>
    %61 = vector.extract_strided_slice %1 {offsets = [2, 0], sizes = [1, 2048], strides = [1, 1]} : vector<4x2048xf32> to vector<1x2048xf32>
    %c2_27 = arith.constant 2 : index
    %c2_28 = arith.constant 2 : index
    %62 = memref.load %arg2[%c2_27, %c2_28] : memref<3x4xf32, #tpu.memory_space<smem>>
    %63 = vector.broadcast %62 : f32 to vector<1x2048xf32>
    %64 = arith.mulf %61, %63 : vector<1x2048xf32>
    %65 = arith.addf %60, %64 : vector<1x2048xf32>
    %66 = vector.extract_strided_slice %1 {offsets = [3, 0], sizes = [1, 2048], strides = [1, 1]} : vector<4x2048xf32> to vector<1x2048xf32>
    %c2_29 = arith.constant 2 : index
    %c3_30 = arith.constant 3 : index
    %67 = memref.load %arg2[%c2_29, %c3_30] : memref<3x4xf32, #tpu.memory_space<smem>>
    %68 = vector.broadcast %67 : f32 to vector<1x2048xf32>
    %69 = arith.mulf %66, %68 : vector<1x2048xf32>
    %70 = arith.addf %65, %69 : vector<1x2048xf32>
    %c2_31 = arith.constant 2 : index
    %71 = memref.load %arg3[%c2_31] : memref<3xf32, #tpu.memory_space<smem>>
    %72 = vector.broadcast %71 : f32 to vector<1x2048xf32>
    %73 = arith.addf %70, %72 : vector<1x2048xf32>
    %c0_32 = arith.constant 0 : index
    %c2_33 = arith.constant 2 : index
    %c0_34 = arith.constant 0 : index
    %74 = vector.load %arg5[%c0_32, %c2_33, %c0_34] : memref<1x3x2048xf32, #tpu.memory_space<vmem>>, vector<1x1x2048xf32>
    %75 = vector.shape_cast %74 : vector<1x1x2048xf32> to vector<1x2048xf32>
    %76 = vector.shape_cast %73 : vector<1x2048xf32> to vector<1x1x2048xf32>
    tpu.vector_store %arg5[%c0_32, %c2_33, %c0_34], %76 {strides = array<i32>} : memref<1x3x2048xf32, #tpu.memory_space<vmem>>, vector<1x1x2048xf32>,
    return
  }
  func.func @transform_0(%arg0: i32, %arg1: i32) -> (i32, i32) {
    %c0_i32 = arith.constant 0 : i32
    %c0_i32_0 = arith.constant 0 : i32
    %c0_i32_1 = arith.constant 0 : i32
    return %c0_i32, %c0_i32_0 : i32, i32
  }
  func.func @transform_1(%arg0: i32, %arg1: i32) -> i32 {
    %c0_i32 = arith.constant 0 : i32
    %c0_i32_0 = arith.constant 0 : i32
    return %c0_i32 : i32
  }
  func.func @transform_2(%arg0: i32, %arg1: i32) -> (i32, i32, i32) {
    %c0_i32 = arith.constant 0 : i32
    %c0_i32_0 = arith.constant 0 : i32
    return %arg0, %c0_i32, %arg1 : i32, i32, i32
  }
  func.func @transform_3(%arg0: i32, %arg1: i32) -> (i32, i32, i32) {
    %c0_i32 = arith.constant 0 : i32
    %c0_i32_0 = arith.constant 0 : i32
    return %arg0, %c0_i32, %arg1 : i32, i32, i32
  }
}

</mosaic_0001>

<bundles_post_ra>
// kernel: tpu_custom_call.1
= control target key start
LH: loop header
LB: loop body
LE: loop exit
PB: predicated region body
PF: predicated region fallthrough
CT: control target
= control target key end

     0   :  { %8 = vsyncpa [#allocation4], 0  ;;  %s2017_s0 = inlined_call_operand.hbm [shape: f32[3,4], index: 0, kind: input, shape index: {}]   ;;  %s2018_s1 = inlined_call_operand.vmem [shape: f32[3], index: 1, kind: input, shape index: {}]   ;;  %s2019_s2 = inlined_call_operand.hbm [shape: f32[2,4,2048], index: 2, kind: input, shape index: {}]   ;;  %s2020_s3 = inlined_call_operand.vmem [shape: f32[2,3,2048], index: 3, kind: output, shape index: {}]  }
   0x1   :  { %9 = vsyncpa [#allocation5], 0 }
   0x2   :  { %10 = vsyncpa [#allocation3], 0 }
   0x3   :  { %12 = vsyncpa [#allocation3 + $0x1], 0  ;;  %s1518_s12 = smov 0   ;;  %s1520_s13 = smov 0  }
   0x4   :  { %s1522_s14 = smov 0   ;;  %s1524_s15 = smov 0  }
   0x5   :  { %s1526_s16 = smov 0   ;;  %s1528_s17 = smov 0  }
   0x6 LB: > { %s1190_s18 = sadd.s32 4294967295, %s1492_s17   ;;  %p94_p0 = scmp.ne.s32.totalorder %s1476_s13, %s1472_s12  ;;  %s1492_s17 = sphi %s1528_s17, %s18_s17   ;;  %s1488_s16 = sphi %s1526_s16, %s2036_s16   ;;  %s1484_s15 = sphi %s1524_s15, %s2035_s15   ;;  %s1480_s14 = sphi %s1522_s14, %s2034_s14   ;;  %s1476_s13 = sphi %s1520_s13, %s2033_s13   ;;  %s1472_s12 = sphi %s1518_s12, %s2032_s12  }
   0x7   : > { %p1548_p1 = scmp.eq.s32.totalorder %s1190_s18, 0  ;;  %p1192_p2 = scmp.ge.s32.totalorder %s1492_s17, 1 }
   0x8   : > { %p133_p3 = scmp.lt.s32.totalorder %s1492_s17, 3  ;;  %s155_s24 = sshll.u32 %s2018_s1, 4  ;;  %s156_s24 = int_to_ptr.vmem [resolvable:$true] %s155_s24 }
   0x9   : > { %s2024_s19 = scalar_select %p1548_p1, 1, 0 }
   0xa   : > { %p1556_p4 = por %p1548_p1, %p94_p0  ;;  %p1560_p5 = pnand %p1192_p2, %p133_p3 }
   0xb   : > { %s30_s26 = sadd.s32 1, %s1488_s16  ;;  %s1376_s30 = scalar_lea.hbm %s2017_s0, 64 }
   0xc   : > { %s2025_s20 = scalar_select %p1556_p4, 1, 0 }
   0xd   : > { %p1309_p6 = pneg %p1560_p5  ;;  %p1576_p8 = scmp.ge.s32.totalorder %s30_s26, 2 }
   0xe   : > { %p1377_p9 = scmp.ne.s32.totalorder %s2017_s0, %s1376_s30  ;;  %p1383_p13 = scmp.lt.u32.totalorder %s1376_s30, %s2017_s0 }
   0xf   : > { %p1571_p7 = pnand %p1309_p6, %p1548_p1 }
  0x11   : > { %p1378_p10 = pneg %p1571_p7 }
  0x13   : > { %p1379_p11 = pnand %p1378_p10, %p1377_p9 }
  0x15   : > { %p1380_p12 = pneg %p1379_p11 }
  0x17   : > { %p1385_p0 = pnand %p1383_p13, %p1380_p12 }
  0x19   : > { %1388 = shalt.err (!%p1385_p0)
}
  0x1a   : > { %s1494_s8 = smov [#allocation2]   ;;  %s1389_s11 = scalar_lea.vmem %s156_s24, 16 }
  0x1b   : > { %1312 = dma.hbm_to_smem (!%p1571_p7), %s2017_s0, 64, %s1494_s8, [#allocation4]  }
  0x1c   : > { %p1390_p2 = scmp.ne.s32.totalorder %s156_s24, %s1389_s11  ;;  %p1397_p4 = scmp.lt.s32.totalorder %s156_s24, %s156_s24 }
  0x1d   : > { %p1398_p9 = scmp.lt.s32.totalorder %s1389_s11, %s1389_s11 }
  0x1e   : > { %p1392_p3 = pnand %p1390_p2, %p1378_p10 }
  0x1f   : > { %p1399_p11 = por %p1398_p9, %p1397_p4 }
  0x20   : > { %p1393_p6 = pneg %p1392_p3 }
  0x22   : > { %p1400_p1 = pnand %p1399_p11, %p1393_p6 }
  0x24   : > { %1403 = shalt.err (!%p1400_p1)
}
  0x25   : > { %s1495_s12 = smov [#allocation6]   ;;  %s2038_s26 = smov (%p1576_p8, %s30_s26), 0 }
  0x26   : > { %1315 = dma.vmem_to_smem (!%p1571_p7), %s156_s24, 16, %s1495_s12, [#allocation5]  }
  0x27   : > { %s81_s18 = sadd.s32 1, %s1480_s14  ;;  %p88_p1 = scmp.ne.s32.totalorder %s1480_s14, %s1476_s13 }
  0x28   : > { %s76_s22 = ssub.s32 %s1488_s16, %s2038_s26  ;;  %p89_p4 = scmp.eq.s32.totalorder %s1492_s17, 0 }
  0x29   : > { %p79_p10 = scmp.eq.s32.totalorder %s76_s22, 0  ;;  %p1322_p12 = scmp.lt.s32.totalorder %s1492_s17, 2 }
  0x2a   : > { %p90_p13 = por %p89_p4, %p88_p1  ;;  %s166_s23 = sand.u32 1, %s1480_s14  }
  0x2b   : > { %s1611_s25 = scalar_select %p79_p10, %s1480_s14, %s81_s18  }
  0x2c   : > { %s1196_s28 = sshll.u32 %s166_s23, 6  ;;  %s1297_s29 = sshll.u32 %s1488_s16, 10 }
  0x2d   : > { %s1617_s24 = scalar_lea.hbm %s2019_s2, %s1297_s29  ;;  %s170_s27 = scalar_lea.vmem [#allocation7], %s1196_s28 }
  0x2e   : > { %s180_s5 = sshll.u32 %s170_s27, 4  ;;  %p1621_p7 = pnand %p1322_p12, %p90_p13  ;;  %s1619_s5 = int_to_ptr.vmem [resolvable:$true] %s180_s5 }
  0x2f   : > { %s167_s7 = scalar_lea.sflag [#allocation3], %s166_s23  ;;  %s1404_s8 = scalar_lea.hbm %s1617_s24, 1024 }
  0x30   : > { %p1405_p8 = scmp.ne.s32.totalorder %s1617_s24, %s1404_s8  ;;  %p1406_p0 = pneg %p1621_p7 }
  0x31   : > { %s1409_s11 = scalar_lea.hbm %s2019_s2, 2048  ;;  %p1410_p6 = scmp.lt.u32.totalorder %s1617_s24, %s2019_s2 }
  0x32   : > { %p1407_p2 = pnand %p1406_p0, %p1405_p8  ;;  %p1411_p9 = scmp.lt.u32.totalorder %s1409_s11, %s1404_s8 }
  0x33   : > { %p1413_p1 = scmp.lt.u32.totalorder %s1404_s8, %s1617_s24 }
  0x34   : > { %p1408_p3 = pneg %p1407_p2  ;;  %p1412_p11 = por %p1411_p9, %p1410_p6 }
  0x36   : > { %p1414_p4 = por %p1413_p1, %p1412_p11 }
  0x38   : > { %p1415_p10 = pnand %p1414_p4, %p1408_p3 }
  0x3a   : > { %1418 = shalt.err (!%p1415_p10)
}
  0x3b   : > { %s1419_s22 = scalar_lea.vmem %s1619_s5, 1024  ;;  %s1496_s23 = smov [#allocation7]  }
  0x3c   : > { %p1420_p12 = scmp.ne.s32.totalorder %s1619_s5, %s1419_s22  ;;  %s1424_s28 = sshll.u32 %s1496_s23, 4  ;;  %s1425_s28 = int_to_ptr.vmem [resolvable:$false] %s1424_s28 }
  0x3d   : > { %s1426_s29 = scalar_lea.vmem %s1425_s28, 2048  ;;  %p1427_p2 = scmp.lt.s32.totalorder %s1619_s5, %s1425_s28 }
  0x3e   : > { %p1422_p13 = pnand %p1420_p12, %p1406_p0  ;;  %p1428_p6 = scmp.lt.s32.totalorder %s1426_s29, %s1419_s22 }
  0x40   : > { %p1423_p8 = pneg %p1422_p13  ;;  %p1429_p9 = por %p1428_p6, %p1427_p2 }
  0x42   : > { %p1430_p11 = pnand %p1429_p9, %p1423_p8 }
  0x44   : > { %1433 = shalt.err (!%p1430_p11)
}
  0x45   : > { %1319 = dma.hbm_to_vmem [thread:$0]  (!%p1621_p7), %s1617_s24, 1024, %s1619_s5, %s167_s7  }
  0x46   : > { %189 = sbr.rel (%p1560_p5) target bundleno = 186 (0xba), region = 32  ;;  %p2030_p0 = scmp.ne.s32.totalorder (!%p1560_p5), %s2024_s19, 0 }
  0x4d   : > { %1459 = dma.done.wait (%p2030_p0), [#allocation4], 64  }
  0x4e   : > { %1461 = vsyncadd (%p2030_p0), [#allocation4], 4294967232 }
  0x4f   : > { %1463 = dma.done.wait (%p2030_p0), [#allocation5], 16  }
  0x50   : > { %1465 = vsyncadd (%p2030_p0), [#allocation5], 4294967280  ;;  %s199_s30 = sand.u32 1, %s1476_s13   ;;  %p2031_p5 = scmp.ne.s32.totalorder %s2025_s20, 0 }
  0x51   : > { %s1202_s4 = sshll.u32 %s199_s30, 6  ;;  %s200_s24 = scalar_lea.sflag [#allocation3], %s199_s30 }
  0x52   : > { %s1661_s27 = scalar_lea.vmem [#allocation7], %s1202_s4 }
  0x53   : > { %1467 = dma.done.wait (%p2031_p5), %s200_s24, 1024  }
  0x54   : > { %1469 = vsyncadd (%p2031_p5), %s200_s24, 4294966272 }
  0x55   : > { %208 = sfence }
  0x56   : > { %s250_s21 = sld [smem:[#allocation2]]  ;;  %v431_v0 = vlaneseq  ;;  %s1205_s19 = sld [smem:[#allocation2 + $0x1]]  ;;  %v1497_v1 = vmov 1966171168   ;;  %v1668_v4 = vld [vmem:[%s1661_s27] sm:$0xff]  ;;  %v1671_v5 = vld [vmem:[%s1661_s27 + $0x8] sm:$0xff] }
  0x57   : > { %s1214_s5 = sld [smem:[#allocation2 + $0x2]]  ;;  %v429_v2 = vunpack.c.l.s4 %v1497_v1  ;;  %v1674_v7 = vld [vmem:[%s1661_s27 + $0x10] sm:$0xff]  ;;  %v1677_v8 = vld [vmem:[%s1661_s27 + $0x18] sm:$0xff]  ;;  %s1679_s20 = sld [smem:[#allocation2 + $0x3]]  ;;  %v1688_v14 = vld [vmem:[%s1661_s27 + $0x20] sm:$0xff] }
  0x58   : > { %v432_v3 = vshrl.u32 %v431_v0, 7  ;;  %s1681_s6 = sld [smem:[#allocation6]]  ;;  %v1708_v39 = vld [vmem:[%s1661_s27 + $0x28] sm:$0xff]  ;;  %v1711_v40 = vld [vmem:[%s1661_s27 + $0x30] sm:$0xff]  ;;  %v1730_v53 = vld [vmem:[%s1661_s27 + $0x38] sm:$0xff]  ;;  %p233_p7 = scmp.lt.s32.totalorder %s1484_s15, 1 }
  0x59   : > { %v430_v6 = vunpack.c.0.s8 %v429_v2  ;;  %s1738_s7 = sld [smem:[#allocation2 + $0x80]]  ;;  %s1759_s8 = sld [smem:[#allocation2 + $0x81]] }
  0x5a   : > { %s2040_s15 = smov (!%p233_p7, %s1484_s15), 1  ;;  %s1782_s12 = sld [smem:[#allocation2 + $0x82]] }
  0x5b   : > { %v1692_v17 = vsub.s32 %v430_v6, %v432_v3  ;;  %s1298_s9 = sshll.u32 %s2040_s15, 6  ;;  %s1796_s18 = sld [smem:[#allocation2 + $0x83]] }
  0x5c   : > { %v251_v9 = vstv %s250_s21  ;;  %v261_v15 = vstv %s1205_s19  ;;  %s1777_s11 = scalar_lea.vmem %s2020_s3, %s1298_s9  ;;  %s1798_s22 = sld [smem:[#allocation6 + $0x1]] }
  0x5d   : > { %v252_v10 = vmul.f32 %v251_v9, %v1668_v4  ;;  %v253_v11 = vmul.f32 %v251_v9, %v1671_v5  ;;  %v254_v12 = vmul.f32 %v251_v9, %v1674_v7  ;;  %v255_v13 = vmul.f32 %v251_v9, %v1677_v8  ;;  %s1867_s23 = sld [smem:[#allocation2 + $0x100]]  ;;  %s1869_s28 = sld [smem:[#allocation2 + $0x101]] }
  0x5e   : > { %v1690_v16 = vstv %s1214_s5  ;;  %v256_v18 = vmul.f32 %v251_v9, %v1688_v14  ;;  %v262_v19 = vmul.f32 %v261_v15, %v1668_v4  ;;  %v263_v20 = vmul.f32 %v261_v15, %v1671_v5  ;;  %s1890_s29 = sld [smem:[#allocation2 + $0x102]]  ;;  %s1908_s30 = sld [smem:[#allocation2 + $0x103]] }
  0x5f   : > { %v264_v21 = vmul.f32 %v261_v15, %v1674_v7  ;;  %v265_v22 = vmul.f32 %v261_v15, %v1677_v8  ;;  %v312_v23 = vmul.f32 %v1690_v16, %v1668_v4  ;;  %v313_v24 = vmul.f32 %v1690_v16, %v1671_v5  ;;  %s1910_s4 = sld [smem:[#allocation6 + $0x2]] }
  0x60   : > { %v314_v25 = vmul.f32 %v1690_v16, %v1674_v7  ;;  %v315_v26 = vmul.f32 %v1690_v16, %v1677_v8  ;;  %v1206_v27 = vrot.slane %v262_v19, 9  ;;  %v1207_v28 = vrot.slane %v263_v20, 9 }
  0x61   : > { %v1208_v29 = vrot.slane %v264_v21, 9  ;;  %v1209_v30 = vrot.slane %v265_v22, 9  ;;  %v1215_v31 = vrot.slane %v312_v23, 10  ;;  %v1216_v32 = vrot.slane %v313_v24, 10 }
  0x62   : > { %v1217_v33 = vrot.slane %v314_v25, 10  ;;  %v1218_v34 = vrot.slane %v315_v26, 10  ;;  %v302_v35 = vadd.f32 %v1206_v27, %v252_v10  ;;  %v303_v36 = vadd.f32 %v1207_v28, %v253_v11 }
  0x63   : > { %v304_v37 = vadd.f32 %v1208_v29, %v254_v12  ;;  %v305_v38 = vadd.f32 %v1209_v30, %v255_v13  ;;  %v1714_v41 = vstv %s1679_s20  ;;  %v1717_v42 = vstv %s1681_s6 }
  0x64   : > { %v257_v43 = vmul.f32 %v251_v9, %v1708_v39  ;;  %v258_v44 = vmul.f32 %v251_v9, %v1711_v40  ;;  %v352_v45 = vadd.f32 %v1215_v31, %v302_v35  ;;  %v353_v46 = vadd.f32 %v1216_v32, %v303_v36 }
  0x65   : > { %v354_v47 = vadd.f32 %v1217_v33, %v304_v37  ;;  %v355_v48 = vadd.f32 %v1218_v34, %v305_v38  ;;  %v362_v49 = vmul.f32 %v1714_v41, %v1668_v4  ;;  %v363_v50 = vmul.f32 %v1714_v41, %v1671_v5 }
  0x66   : > { %v364_v51 = vmul.f32 %v1714_v41, %v1674_v7  ;;  %v365_v52 = vmul.f32 %v1714_v41, %v1677_v8  ;;  %v259_v54 = vmul.f32 %v251_v9, %v1730_v53  ;;  %v266_v55 = vmul.f32 %v261_v15, %v1688_v14 }
  0x67   : > { %v267_v56 = vmul.f32 %v261_v15, %v1708_v39  ;;  %v268_v57 = vmul.f32 %v261_v15, %v1711_v40  ;;  %v1224_v58 = vrot.slane %v362_v49, 11  ;;  %v1225_v59 = vrot.slane %v363_v50, 11 }
  0x68   : > { %v1226_v60 = vrot.slane %v364_v51, 11  ;;  %v1227_v61 = vrot.slane %v365_v52, 11  ;;  %v269_v62 = vmul.f32 %v261_v15, %v1730_v53  ;;  %v1210_v63 = vrot.slane %v266_v55, 9 }
  0x69   : > { %v1211_v0 = vrot.slane %v267_v56, 9  ;;  %v1212_v1 = vrot.slane %v268_v57, 9  ;;  %v402_v2 = vadd.f32 %v1224_v58, %v352_v45  ;;  %v403_v3 = vadd.f32 %v1225_v59, %v353_v46 }
  0x6a   : > { %v404_v6 = vadd.f32 %v1226_v60, %v354_v47  ;;  %v405_v9 = vadd.f32 %v1227_v61, %v355_v48  ;;  %v1213_v10 = vrot.slane %v269_v62, 9  ;;  %v306_v11 = vadd.f32 %v1210_v63, %v256_v18 }
  0x6b   : > { %v307_v12 = vadd.f32 %v1211_v0, %v257_v43  ;;  %v308_v13 = vadd.f32 %v1212_v1, %v258_v44  ;;  %v412_v19 = vadd.f32 %v1717_v42, %v402_v2  ;;  %v413_v15 = vadd.f32 %v1717_v42, %v403_v3 }
  0x6c   : > { %v414_v20 = vadd.f32 %v1717_v42, %v404_v6  ;;  %v415_v21 = vadd.f32 %v1717_v42, %v405_v9  ;;  %v309_v22 = vadd.f32 %v1213_v10, %v259_v54  ;;  %v316_v18 = vmul.f32 %v1690_v16, %v1688_v14 }
  0x6d   : > { %v317_v23 = vmul.f32 %v1690_v16, %v1708_v39  ;;  %v318_v24 = vmul.f32 %v1690_v16, %v1711_v40  ;;  %v434_v25 = vrot.slane %v412_v19, %v1692_v17  ;;  %v441_v26 = vrot.slane %v413_v15, %v1692_v17 }
  0x6e   : > { %v448_v27 = vrot.slane %v414_v20, %v1692_v17  ;;  %v455_v28 = vrot.slane %v415_v21, %v1692_v17  ;;  %v319_v29 = vmul.f32 %v1690_v16, %v1730_v53  ;;  %v1219_v30 = vrot.slane %v316_v18, 10 }
  0x6f   : > { %v1220_v31 = vrot.slane %v317_v23, 10  ;;  %v1221_v32 = vrot.slane %v318_v24, 10  ;;  %v456_v33 = vcombine.low %v434_v25, %v441_v26  ;;  %v366_v35 = vmul.f32 %v1714_v41, %v1688_v14 }
  0x70   : > { %v457_v34 = vcombine.low %v448_v27, %v455_v28  ;;  %v367_v36 = vmul.f32 %v1714_v41, %v1708_v39  ;;  %v1222_v37 = vrot.slane %v319_v29, 10  ;;  %v356_v38 = vadd.f32 %v1219_v30, %v306_v11 }
  0x71   : > { %v357_v43 = vadd.f32 %v1220_v31, %v307_v12  ;;  %v358_v44 = vadd.f32 %v1221_v32, %v308_v13  ;;  %v464_v45 = vrot.slane %v456_v33, %v1692_v17  ;;  %v368_v46 = vmul.f32 %v1714_v41, %v1711_v40 }
  0x72   : > { %v471_v16 = vrot.slane %v457_v34, %v1692_v17  ;;  %v369_v47 = vmul.f32 %v1714_v41, %v1730_v53  ;;  %v359_v48 = vadd.f32 %v1222_v37, %v309_v22  ;;  %v1228_v49 = vrot.slane %v366_v35, 11 }
  0x73   : > { %v1229_v50 = vrot.slane %v367_v36, 11  ;;  %v1780_v51 = vstv %s1738_s7  ;;  %v1230_v54 = vrot.slane %v368_v46, 11  ;;  %v1794_v63 = vstv %s1759_s8 }
  0x74   : > { %v472_v52 = vcombine.low %v464_v45, %v471_v16  ;;  %v1231_v55 = vrot.slane %v369_v47, 11  ;;  %v525_v41 = vmul.f32 %v1780_v51, %v1668_v4  ;;  %v406_v56 = vadd.f32 %v1228_v49, %v356_v38 }
  0x75   : > { %v407_v57 = vadd.f32 %v1229_v50, %v357_v43  ;;  %v526_v58 = vmul.f32 %v1780_v51, %v1671_v5  ;;  %v527_v59 = vmul.f32 %v1780_v51, %v1674_v7  ;;  %v408_v60 = vadd.f32 %v1230_v54, %v358_v44 }
  0x76   : > { %520 = vst [vmem:[%s1777_s11] ss:$4 sm:$0xff] %v472_v52  ;;  %v409_v61 = vadd.f32 %v1231_v55, %v359_v48  ;;  %v528_v62 = vmul.f32 %v1780_v51, %v1677_v8  ;;  %v416_v0 = vadd.f32 %v1717_v42, %v406_v56  ;;  %v535_v2 = vmul.f32 %v1794_v63, %v1668_v4 }
  0x77   : > { %v417_v1 = vadd.f32 %v1717_v42, %v407_v57  ;;  %v536_v3 = vmul.f32 %v1794_v63, %v1671_v5  ;;  %v418_v6 = vadd.f32 %v1717_v42, %v408_v60  ;;  %v537_v10 = vmul.f32 %v1794_v63, %v1674_v7 }
  0x78   : > { %v419_v9 = vadd.f32 %v1717_v42, %v409_v61  ;;  %v538_v11 = vmul.f32 %v1794_v63, %v1677_v8  ;;  %v479_v12 = vrot.slane %v416_v0, %v1692_v17  ;;  %v1235_v19 = vrot.slane %v535_v2, 9 }
  0x79   : > { %v486_v13 = vrot.slane %v417_v1, %v1692_v17  ;;  %v1236_v15 = vrot.slane %v536_v3, 9  ;;  %v493_v20 = vrot.slane %v418_v6, %v1692_v17  ;;  %v1237_v22 = vrot.slane %v537_v10, 9 }
  0x7a   : > { %v500_v21 = vrot.slane %v419_v9, %v1692_v17  ;;  %v1238_v18 = vrot.slane %v538_v11, 9  ;;  %v575_v23 = vadd.f32 %v1235_v19, %v525_v41  ;;  %v1817_v25 = vstv %s1782_s12 }
  0x7b   : > { %v501_v42 = vcombine.low %v479_v12, %v486_v13  ;;  %v576_v24 = vadd.f32 %v1236_v15, %v526_v58  ;;  %v577_v27 = vadd.f32 %v1237_v22, %v527_v59  ;;  %v585_v29 = vmul.f32 %v1817_v25, %v1668_v4 }
  0x7c   : > { %v502_v26 = vcombine.low %v493_v20, %v500_v21  ;;  %v578_v28 = vadd.f32 %v1238_v18, %v528_v62  ;;  %v586_v31 = vmul.f32 %v1817_v25, %v1671_v5  ;;  %v587_v32 = vmul.f32 %v1817_v25, %v1674_v7 }
  0x7d   : > { %v509_v30 = vrot.slane %v501_v42, %v1692_v17  ;;  %v588_v33 = vmul.f32 %v1817_v25, %v1677_v8  ;;  %v1244_v35 = vrot.slane %v585_v29, 10  ;;  %v1830_v36 = vstv %s1796_s18 }
  0x7e   : > { %v516_v34 = vrot.slane %v502_v26, %v1692_v17  ;;  %v1833_v37 = vstv %s1798_s22  ;;  %v1245_v38 = vrot.slane %v586_v31, 10  ;;  %v1246_v43 = vrot.slane %v587_v32, 10 }
  0x7f   : > { %v1247_v44 = vrot.slane %v588_v33, 10  ;;  %v635_v45 = vmul.f32 %v1830_v36, %v1668_v4  ;;  %v625_v46 = vadd.f32 %v1244_v35, %v575_v23  ;;  %v636_v47 = vmul.f32 %v1830_v36, %v1671_v5 }
  0x80   : > { %v517_v16 = vcombine.low %v509_v30, %v516_v34  ;;  %v637_v48 = vmul.f32 %v1830_v36, %v1674_v7  ;;  %v626_v49 = vadd.f32 %v1245_v38, %v576_v24  ;;  %v627_v50 = vadd.f32 %v1246_v43, %v577_v27 }
  0x81   : > { %v628_v52 = vadd.f32 %v1247_v44, %v578_v28  ;;  %v638_v54 = vmul.f32 %v1830_v36, %v1677_v8  ;;  %v1253_v55 = vrot.slane %v635_v45, 11  ;;  %v1254_v41 = vrot.slane %v636_v47, 11 }
  0x82   : > { %1232 = vst [vmem:[%s1777_s11 + $0x20] ss:$4 sm:$0xff] %v517_v16  ;;  %v1255_v56 = vrot.slane %v637_v48, 11  ;;  %v529_v57 = vmul.f32 %v1780_v51, %v1688_v14  ;;  %v530_v59 = vmul.f32 %v1780_v51, %v1708_v39  ;;  %v531_v60 = vmul.f32 %v1780_v51, %v1711_v40 }
  0x83   : > { %v1256_v58 = vrot.slane %v638_v54, 11  ;;  %v532_v61 = vmul.f32 %v1780_v51, %v1730_v53  ;;  %v675_v62 = vadd.f32 %v1253_v55, %v625_v46  ;;  %v676_v0 = vadd.f32 %v1254_v41, %v626_v49 }
  0x84   : > { %v677_v1 = vadd.f32 %v1255_v56, %v627_v50  ;;  %v539_v2 = vmul.f32 %v1794_v63, %v1688_v14  ;;  %v540_v6 = vmul.f32 %v1794_v63, %v1708_v39  ;;  %v541_v9 = vmul.f32 %v1794_v63, %v1711_v40 }
  0x85   : > { %v678_v3 = vadd.f32 %v1256_v58, %v628_v52  ;;  %v542_v10 = vmul.f32 %v1794_v63, %v1730_v53  ;;  %v685_v11 = vadd.f32 %v1833_v37, %v675_v62  ;;  %v686_v51 = vadd.f32 %v1833_v37, %v676_v0 }
  0x86   : > { %v687_v12 = vadd.f32 %v1833_v37, %v677_v1  ;;  %v1239_v13 = vrot.slane %v539_v2, 9  ;;  %v1240_v15 = vrot.slane %v540_v6, 9  ;;  %v1241_v20 = vrot.slane %v541_v9, 9 }
  0x87   : > { %v688_v19 = vadd.f32 %v1833_v37, %v678_v3  ;;  %v1242_v21 = vrot.slane %v542_v10, 9  ;;  %v707_v22 = vrot.slane %v685_v11, %v1692_v17  ;;  %v714_v18 = vrot.slane %v686_v51, %v1692_v17 }
  0x88   : > { %v721_v42 = vrot.slane %v687_v12, %v1692_v17  ;;  %v579_v23 = vadd.f32 %v1239_v13, %v529_v57  ;;  %v580_v24 = vadd.f32 %v1240_v15, %v530_v59  ;;  %v581_v26 = vadd.f32 %v1241_v20, %v531_v60 }
  0x89   : > { %v728_v63 = vrot.slane %v688_v19, %v1692_v17  ;;  %v582_v27 = vadd.f32 %v1242_v21, %v532_v61  ;;  %v729_v28 = vcombine.low %v707_v22, %v714_v18  ;;  %v589_v29 = vmul.f32 %v1817_v25, %v1688_v14 }
  0x8a   : > { %v590_v30 = vmul.f32 %v1817_v25, %v1708_v39  ;;  %v591_v31 = vmul.f32 %v1817_v25, %v1711_v40  ;;  %v592_v33 = vmul.f32 %v1817_v25, %v1730_v53  ;;  %v639_v34 = vmul.f32 %v1830_v36, %v1688_v14 }
  0x8b   : > { %v730_v32 = vcombine.low %v721_v42, %v728_v63  ;;  %v640_v35 = vmul.f32 %v1830_v36, %v1708_v39  ;;  %v737_v38 = vrot.slane %v729_v28, %v1692_v17  ;;  %v1248_v43 = vrot.slane %v589_v29, 10 }
  0x8c   : > { %v1249_v44 = vrot.slane %v590_v30, 10  ;;  %v1250_v45 = vrot.slane %v591_v31, 10  ;;  %v1251_v46 = vrot.slane %v592_v33, 10  ;;  %v641_v25 = vmul.f32 %v1830_v36, %v1711_v40 }
  0x8d   : > { %v744_v16 = vrot.slane %v730_v32, %v1692_v17  ;;  %v642_v47 = vmul.f32 %v1830_v36, %v1730_v53  ;;  %v629_v48 = vadd.f32 %v1248_v43, %v579_v23  ;;  %v1257_v52 = vrot.slane %v639_v34, 11 }
  0x8e   : > { %v630_v49 = vadd.f32 %v1249_v44, %v580_v24  ;;  %v631_v50 = vadd.f32 %v1250_v45, %v581_v26  ;;  %v632_v55 = vadd.f32 %v1251_v46, %v582_v27  ;;  %v1258_v41 = vrot.slane %v640_v35, 11 }
  0x8f   : > { %v745_v54 = vcombine.low %v737_v38, %v744_v16  ;;  %v1259_v56 = vrot.slane %v641_v25, 11  ;;  %v1260_v57 = vrot.slane %v642_v47, 11  ;;  %v679_v58 = vadd.f32 %v1257_v52, %v629_v48 }
  0x90   : > { %v1893_v59 = vstv %s1867_s23  ;;  %v1896_v60 = vstv %s1869_s28  ;;  %v680_v61 = vadd.f32 %v1258_v41, %v630_v49  ;;  %v908_v45 = vstv %s1908_s30 }
  0x91   : > { %1262 = vst [vmem:[%s1777_s11 + $0x1] ss:$4 sm:$0xff] %v745_v54  ;;  %v681_v62 = vadd.f32 %v1259_v56, %v631_v50  ;;  %v799_v36 = vmul.f32 %v1893_v59, %v1668_v4  ;;  %v800_v0 = vmul.f32 %v1893_v59, %v1671_v5  ;;  %v682_v1 = vadd.f32 %v1260_v57, %v632_v55 }
  0x92   : > { %v689_v2 = vadd.f32 %v1833_v37, %v679_v58  ;;  %v801_v3 = vmul.f32 %v1893_v59, %v1674_v7  ;;  %v802_v6 = vmul.f32 %v1893_v59, %v1677_v8  ;;  %v690_v9 = vadd.f32 %v1833_v37, %v680_v61 }
  0x93   : > { %v691_v10 = vadd.f32 %v1833_v37, %v681_v62  ;;  %v809_v11 = vmul.f32 %v1896_v60, %v1668_v4  ;;  %v810_v51 = vmul.f32 %v1896_v60, %v1671_v5  ;;  %v692_v12 = vadd.f32 %v1833_v37, %v682_v1 }
  0x94   : > { %v752_v13 = vrot.slane %v689_v2, %v1692_v17  ;;  %v811_v19 = vmul.f32 %v1896_v60, %v1674_v7  ;;  %v812_v15 = vmul.f32 %v1896_v60, %v1677_v8  ;;  %v759_v20 = vrot.slane %v690_v9, %v1692_v17 }
  0x95   : > { %v766_v21 = vrot.slane %v691_v10, %v1692_v17  ;;  %v1266_v22 = vrot.slane %v809_v11, 9  ;;  %v1267_v18 = vrot.slane %v810_v51, 9  ;;  %v773_v42 = vrot.slane %v692_v12, %v1692_v17 }
  0x96   : > { %v1268_v23 = vrot.slane %v811_v19, 9  ;;  %v1269_v63 = vrot.slane %v812_v15, 9  ;;  %v1928_v37 = vstv %s1890_s29  ;;  %v774_v24 = vcombine.low %v752_v13, %v759_v20 }
  0x97   : > { %v849_v26 = vadd.f32 %v1266_v22, %v799_v36  ;;  %v850_v27 = vadd.f32 %v1267_v18, %v800_v0  ;;  %v859_v28 = vmul.f32 %v1928_v37, %v1668_v4  ;;  %v775_v29 = vcombine.low %v766_v21, %v773_v42 }
  0x98   : > { %v851_v30 = vadd.f32 %v1268_v23, %v801_v3  ;;  %v852_v31 = vadd.f32 %v1269_v63, %v802_v6  ;;  %v860_v32 = vmul.f32 %v1928_v37, %v1671_v5  ;;  %v782_v33 = vrot.slane %v774_v24, %v1692_v17 }
  0x99   : > { %v861_v34 = vmul.f32 %v1928_v37, %v1674_v7  ;;  %v862_v35 = vmul.f32 %v1928_v37, %v1677_v8  ;;  %v1275_v38 = vrot.slane %v859_v28, 10  ;;  %v789_v43 = vrot.slane %v775_v29, %v1692_v17 }
  0x9a   : > { %v1276_v44 = vrot.slane %v860_v32, 10  ;;  %v1942_v16 = vstv %s1910_s4  ;;  %v909_v48 = vmul.f32 %v908_v45, %v1668_v4  ;;  %v910_v52 = vmul.f32 %v908_v45, %v1671_v5 }
  0x9b   : > { %v1277_v46 = vrot.slane %v861_v34, 10  ;;  %v1278_v25 = vrot.slane %v862_v35, 10  ;;  %v899_v47 = vadd.f32 %v1275_v38, %v849_v26  ;;  %v790_v49 = vcombine.low %v782_v33, %v789_v43 }
  0x9c   : > { %v900_v50 = vadd.f32 %v1276_v44, %v850_v27  ;;  %v911_v54 = vmul.f32 %v908_v45, %v1674_v7  ;;  %v912_v56 = vmul.f32 %v908_v45, %v1677_v8  ;;  %v1284_v57 = vrot.slane %v909_v48, 11 }
  0x9d   : > { %v901_v55 = vadd.f32 %v1277_v46, %v851_v30  ;;  %v902_v41 = vadd.f32 %v1278_v25, %v852_v31  ;;  %1263 = vst [vmem:[%s1777_s11 + $0x21] ss:$4 sm:$0xff] %v790_v49  ;;  %v1285_v58 = vrot.slane %v910_v52, 11  ;;  %v803_v62 = vmul.f32 %v1893_v59, %v1688_v14 }
  0x9e   : > { %v1286_v61 = vrot.slane %v911_v54, 11  ;;  %v804_v4 = vmul.f32 %v1893_v59, %v1708_v39  ;;  %v1287_v36 = vrot.slane %v912_v56, 11  ;;  %v949_v0 = vadd.f32 %v1284_v57, %v899_v47 }
  0x9f   : > { %v805_v5 = vmul.f32 %v1893_v59, %v1711_v40  ;;  %v806_v7 = vmul.f32 %v1893_v59, %v1730_v53  ;;  %v950_v1 = vadd.f32 %v1285_v58, %v900_v50  ;;  %v813_v2 = vmul.f32 %v1896_v60, %v1688_v14 }
  0xa0   : > { %v951_v8 = vadd.f32 %v1286_v61, %v901_v55  ;;  %v814_v3 = vmul.f32 %v1896_v60, %v1708_v39  ;;  %v952_v6 = vadd.f32 %v1287_v36, %v902_v41  ;;  %v959_v9 = vadd.f32 %v1942_v16, %v949_v0 }
  0xa1   : > { %v815_v10 = vmul.f32 %v1896_v60, %v1711_v40  ;;  %v816_v11 = vmul.f32 %v1896_v60, %v1730_v53  ;;  %v960_v51 = vadd.f32 %v1942_v16, %v950_v1  ;;  %v1270_v12 = vrot.slane %v813_v2, 9 }
  0xa2   : > { %v961_v59 = vadd.f32 %v1942_v16, %v951_v8  ;;  %v1271_v13 = vrot.slane %v814_v3, 9  ;;  %v962_v19 = vadd.f32 %v1942_v16, %v952_v6  ;;  %v981_v15 = vrot.slane %v959_v9, %v1692_v17 }
  0xa3   : > { %v1272_v20 = vrot.slane %v815_v10, 9  ;;  %v1273_v21 = vrot.slane %v816_v11, 9  ;;  %v988_v22 = vrot.slane %v960_v51, %v1692_v17  ;;  %v853_v42 = vadd.f32 %v1270_v12, %v803_v62 }
  0xa4   : > { %v995_v18 = vrot.slane %v961_v59, %v1692_v17  ;;  %v854_v23 = vadd.f32 %v1271_v13, %v804_v4  ;;  %v1002_v60 = vrot.slane %v962_v19, %v1692_v17  ;;  %v863_v26 = vmul.f32 %v1928_v37, %v1688_v14 }
  0xa5   : > { %v855_v63 = vadd.f32 %v1272_v20, %v805_v5  ;;  %v856_v24 = vadd.f32 %v1273_v21, %v806_v7  ;;  %v1003_v27 = vcombine.low %v981_v15, %v988_v22  ;;  %v864_v28 = vmul.f32 %v1928_v37, %v1708_v39 }
  0xa6   : > { %v865_v29 = vmul.f32 %v1928_v37, %v1711_v40  ;;  %v866_v30 = vmul.f32 %v1928_v37, %v1730_v53  ;;  %v1004_v31 = vcombine.low %v995_v18, %v1002_v60  ;;  %v1279_v32 = vrot.slane %v863_v26, 10 }
  0xa7   : > { %v913_v33 = vmul.f32 %v908_v45, %v1688_v14  ;;  %v914_v34 = vmul.f32 %v908_v45, %v1708_v39  ;;  %v1011_v35 = vrot.slane %v1003_v27, %v1692_v17  ;;  %v1280_v38 = vrot.slane %v864_v28, 10 }
  0xa8   : > { %v1281_v43 = vrot.slane %v865_v29, 10  ;;  %v1282_v44 = vrot.slane %v866_v30, 10  ;;  %v1018_v46 = vrot.slane %v1004_v31, %v1692_v17  ;;  %v903_v25 = vadd.f32 %v1279_v32, %v853_v42 }
  0xa9   : > { %v915_v47 = vmul.f32 %v908_v45, %v1711_v40  ;;  %v916_v48 = vmul.f32 %v908_v45, %v1730_v53  ;;  %v904_v37 = vadd.f32 %v1280_v38, %v854_v23  ;;  %v1288_v52 = vrot.slane %v913_v33, 11 }
  0xaa   : > { %v905_v49 = vadd.f32 %v1281_v43, %v855_v63  ;;  %v906_v50 = vadd.f32 %v1282_v44, %v856_v24  ;;  %v1019_v14 = vcombine.low %v1011_v35, %v1018_v46  ;;  %v1289_v54 = vrot.slane %v914_v34, 11 }
  0xab   : > { %v1290_v39 = vrot.slane %v915_v47, 11  ;;  %v1291_v55 = vrot.slane %v916_v48, 11  ;;  %v953_v41 = vadd.f32 %v1288_v52, %v903_v25 }
  0xac   : > { %1293 = vst [vmem:[%s1777_s11 + $0x2] ss:$4 sm:$0xff] %v1019_v14  ;;  %v954_v56 = vadd.f32 %v1289_v54, %v904_v37 }
  0xad   : > { %v955_v57 = vadd.f32 %v1290_v39, %v905_v49  ;;  %v956_v58 = vadd.f32 %v1291_v55, %v906_v50  ;;  %v963_v61 = vadd.f32 %v1942_v16, %v953_v41 }
  0xae   : > { %v964_v40 = vadd.f32 %v1942_v16, %v954_v56 }
  0xaf   : > { %v965_v53 = vadd.f32 %v1942_v16, %v955_v57  ;;  %v966_v45 = vadd.f32 %v1942_v16, %v956_v58  ;;  %v1026_v62 = vrot.slane %v963_v61, %v1692_v17 }
  0xb0   : > { %v1033_v4 = vrot.slane %v964_v40, %v1692_v17 }
  0xb1   : > { %v1040_v36 = vrot.slane %v965_v53, %v1692_v17  ;;  %v1047_v0 = vrot.slane %v966_v45, %v1692_v17 }
  0xb2   : > { %v1048_v5 = vcombine.low %v1026_v62, %v1033_v4 }
  0xb3   : > { %v1049_v7 = vcombine.low %v1040_v36, %v1047_v0 }
  0xb4   : > { %v1056_v1 = vrot.slane %v1048_v5, %v1692_v17 }
  0xb5   : > { %v1063_v8 = vrot.slane %v1049_v7, %v1692_v17 }
  0xb7   : > { %v1064_v2 = vcombine.low %v1056_v1, %v1063_v8 }
  0xb9   : > { %1294 = vst [vmem:[%s1777_s11 + $0x22] ss:$4 sm:$0xff] %v1064_v2 }
  0xba PF: > { %s18_s17 = sadd.s32 1, %s1492_s17   ;;  %s2032_s12 = smov %s1476_s13 }
  0xbb   : > { %p15_p3 = scmp.ge.s32.totalorder %s18_s17, 4   ;;  %s2033_s13 = smov %s1480_s14 }
  0xbc   : > { %s2034_s14 = smov %s1611_s25  ;;  %s2035_s15 = smov %s1488_s16 }
  0xbd   : > { %s2036_s16 = smov %s2038_s26  ;;  %17 = sbr.rel (!%p15_p3) target bundleno = 6 (0x6), region = 87 }
  0xc4   :  { %1101 = vsyncpa [#allocation3], 1 }
  0xc5   :  { %1103 = vsyncpa [#allocation3 + $0x1], 1 }
  0xc6   :  { %1104 = vsyncpa [#allocation4], 1 }
  0xc7   :  { %1106 = vsyncpa [#allocation4 + $0x1], 1 }
  0xc8   :  { %1107 = vsyncpa [#allocation5], 1 }
  0xc9   :  { %1109 = vsyncpa [#allocation5 + $0x1], 1 }

</bundles_post_ra>
